<compile_context>
chip_gen: v5e
topology: v5e:2x2
jax: 0.10.0
libtpu: 0.0.40
codegen_flags: <defaults>
</compile_context>

<pallas_src>
import functools

import jax
import jax.numpy as jnp
from jax.experimental import pallas as pl
from jax.experimental.pallas import tpu as pltpu

LANE = 128      # lane width / padded fc3 output columns (lane-dense unmasked store)
MIN_TILE = 16   # bf16 sublane packing granule for the batch axis


def _round_up(n, m):
    return ((n + m - 1) // m) * m


# ----------------------------------------------------------------------------- kernel
def qnetwork_kernel(x_ref, w1_ref, b1_ref, w2_ref, b2_ref, w3_ref, b3_ref, o_ref):
    # x arrives f32; cast to bf16 in-kernel (no wrapper-side cast pass over HBM).
    x = x_ref[...].astype(jnp.bfloat16)
    # fc1 + ReLU  (bf16 operands, f32 accumulation; activations kept f32 on v5e-safe VPU)
    h1 = jnp.dot(x, w1_ref[...], preferred_element_type=jnp.float32)
    h1 = jnp.maximum(h1 + b1_ref[...], 0.0).astype(jnp.bfloat16)
    # fc2 + ReLU
    h2 = jnp.dot(h1, w2_ref[...], preferred_element_type=jnp.float32)
    h2 = jnp.maximum(h2 + b2_ref[...], 0.0).astype(jnp.bfloat16)
    # fc3 (zero-padded to 128 lanes, no activation) -> lane-dense bf16 store (half the
    # HBM writeback of f32).
    out = jnp.dot(h2, w3_ref[...], preferred_element_type=jnp.float32)
    o_ref[...] = (out + b3_ref[...]).astype(o_ref.dtype)


# ----------------------------------------------------------------------- param prep
def prepare_params(params):
    """One-time (outside the hot path): bf16 weights, f32 biases, fc3 padded to 128."""
    w1, b1 = params["w1"], params["b1"]
    w2, b2 = params["w2"], params["b2"]
    w3, b3 = params["w3"], params["b3"]
    hidden, action_dim = w3.shape
    out_pad = _round_up(max(action_dim, 1), LANE)
    w3p = jnp.zeros((hidden, out_pad), jnp.bfloat16).at[:, :action_dim].set(
        w3.astype(jnp.bfloat16))
    b3p = jnp.zeros((1, out_pad), jnp.float32).at[:, :action_dim].set(
        b3.astype(jnp.float32).reshape(1, -1))
    return {
        "w1": w1.astype(jnp.bfloat16),
        "b1": b1.astype(jnp.float32).reshape(1, -1),
        "w2": w2.astype(jnp.bfloat16),
        "b2": b2.astype(jnp.float32).reshape(1, -1),
        "w3": w3p,
        "b3": b3p,
        "action_dim": action_dim,
    }


def _batch_tile(B, block_b):
    """Pick the batch tile: big (amortize step overhead) but >=2 grid steps when possible."""
    b_min = _round_up(max(B, 1), MIN_TILE)
    half = _round_up((b_min + 1) // 2, MIN_TILE)   # aim for >=2 steps (v7x megacore)
    tb = max(MIN_TILE, min(block_b, half))
    tb = _round_up(tb, MIN_TILE)
    b_pad = _round_up(b_min, tb)
    return tb, b_pad


# ----------------------------------------------------------------------------- forward
@functools.partial(jax.jit, static_argnames=("action_dim", "block_b"))
def _qnetwork_forward_impl(x, w1, b1, w2, b2, w3, b3, *, action_dim, block_b):
    B, state_dim = x.shape
    out_pad = w3.shape[1]

    tb, b_pad = _batch_tile(B, block_b)
    if b_pad != B:
        x = jnp.pad(x, ((0, b_pad - B), (0, 0)))

    grid = (b_pad // tb,)

    def resident(shape):
        # whole array as one block, constant index map -> stays resident in VMEM
        return pl.BlockSpec(shape, lambda i: tuple(0 for _ in shape))

    out = pl.pallas_call(
        qnetwork_kernel,
        out_shape=jax.ShapeDtypeStruct((b_pad, out_pad), jnp.bfloat16),
        grid_spec=pltpu.PrefetchScalarGridSpec(
            num_scalar_prefetch=0,
            grid=grid,
            in_specs=[
                pl.BlockSpec((tb, state_dim), lambda i: (i, 0)),  # x: batch-tiled, f32
                resident(w1.shape), resident(b1.shape),
                resident(w2.shape), resident(b2.shape),
                resident(w3.shape), resident(b3.shape),
            ],
            out_specs=pl.BlockSpec((tb, out_pad), lambda i: (i, 0)),
        ),
        compiler_params=pltpu.CompilerParams(
            dimension_semantics=("parallel",),      # shard batch tiles across TCs (v7x)
            vmem_limit_bytes=32 * 1024 * 1024,      # headroom for big tiles on v5e
        ),
    )(x, w1, b1, w2, b2, w3, b3)

    return out[:B, :action_dim].astype(jnp.float32)


def qnetwork_forward(x, prepared, *, block_b=2048):
    """x: (B, state_dim) f32; prepared: output of prepare_params()."""
    return _qnetwork_forward_impl(
        x, prepared["w1"], prepared["b1"], prepared["w2"], prepared["b2"],
        prepared["w3"], prepared["b3"],
        action_dim=int(prepared["action_dim"]), block_b=block_b)


# ----------------------------------------------------------------------------- init
def init_params(key, state_dim, action_dim, hidden=128):
    """Deterministic init mimicking PyTorch nn.Linear (uniform +/- 1/sqrt(fan_in))."""
    ks = jax.random.split(key, 6)

    def linear(kw, kb, fan_in, fan_out):
        bound = 1.0 / jnp.sqrt(fan_in)
        w = jax.random.uniform(kw, (fan_in, fan_out), jnp.float32,
                               minval=-bound, maxval=bound)
        b = jax.random.uniform(kb, (1, fan_out), jnp.float32,
                               minval=-bound, maxval=bound)
        return w, b

    w1, b1 = linear(ks[0], ks[1], state_dim, hidden)
    w2, b2 = linear(ks[2], ks[3], hidden, hidden)
    w3, b3 = linear(ks[4], ks[5], hidden, action_dim)
    return {"w1": w1, "b1": b1, "w2": w2, "b2": b2, "w3": w3, "b3": b3}


if __name__ == "__main__":
    key = jax.random.PRNGKey(0)
    k_x, k_p = jax.random.split(key)

    batch = 8
    state_dim = 4     # e.g. CartPole-style state
    action_dim = 2

    x = jax.random.normal(k_x, (batch, state_dim), jnp.float32)
    params = init_params(k_p, state_dim, action_dim)
    prepared = prepare_params(params)   # one-time prep, outside the hot path

    q_values = qnetwork_forward(x, prepared)
    jax.block_until_ready(q_values)

    # f32 reference (kernel uses bf16 operands / bf16 output with f32 accumulation)
    h1 = jnp.maximum(x @ params["w1"] + params["b1"], 0.0)
    h2 = jnp.maximum(h1 @ params["w2"] + params["b2"], 0.0)
    ref = h2 @ params["w3"] + params["b3"]

    assert q_values.shape == (batch, action_dim)
    assert jnp.allclose(q_values, ref, atol=5e-2, rtol=5e-2), (
        float(jnp.max(jnp.abs(q_values - ref))))

    print("KERNEL_OK")
</pallas_src>

<mosaic_0001>
module attributes {stable_mosaic.version = 11 : i64} {
  func.func @qnetwork_kernel(%arg0: i32, %arg1: memref<16x4xf32, #tpu.memory_space<vmem>>, %arg2: memref<4x128xbf16, #tpu.memory_space<vmem>>, %arg3: memref<1x128xf32, #tpu.memory_space<vmem>>, %arg4: memref<128x128xbf16, #tpu.memory_space<vmem>>, %arg5: memref<1x128xf32, #tpu.memory_space<vmem>>, %arg6: memref<128x128xbf16, #tpu.memory_space<vmem>>, %arg7: memref<1x128xf32, #tpu.memory_space<vmem>>, %arg8: memref<16x128xbf16, #tpu.memory_space<vmem>>) attributes {dimension_semantics = [#tpu.dimension_semantics<parallel>], iteration_bounds = array<i64: 1>, scalar_prefetch = 0 : i64, scratch_operands = 0 : i64, tpu.core_type = #tpu.core_type<tc>, window_params = [{transform_indices = @transform_0, window_bounds = array<i64: 16, 4>}, {pipeline_mode = #tpu.pipeline_mode<synchronous>, transform_indices = @transform_1, window_bounds = array<i64: 4, 128>}, {pipeline_mode = #tpu.pipeline_mode<synchronous>, transform_indices = @transform_2, window_bounds = array<i64: 1, 128>}, {pipeline_mode = #tpu.pipeline_mode<synchronous>, transform_indices = @transform_3, window_bounds = array<i64: 128, 128>}, {pipeline_mode = #tpu.pipeline_mode<synchronous>, transform_indices = @transform_4, window_bounds = array<i64: 1, 128>}, {pipeline_mode = #tpu.pipeline_mode<synchronous>, transform_indices = @transform_5, window_bounds = array<i64: 128, 128>}, {pipeline_mode = #tpu.pipeline_mode<synchronous>, transform_indices = @transform_6, window_bounds = array<i64: 1, 128>}, {transform_indices = @transform_7, window_bounds = array<i64: 16, 128>}]} {
    %c0 = arith.constant 0 : index
    %c0_0 = arith.constant 0 : index
    %0 = vector.load %arg1[%c0, %c0_0] : memref<16x4xf32, #tpu.memory_space<vmem>>, vector<16x4xf32>
    %1 = arith.truncf %0 : vector<16x4xf32> to vector<16x4xbf16>
    %c0_1 = arith.constant 0 : index
    %c0_2 = arith.constant 0 : index
    %2 = vector.load %arg2[%c0_1, %c0_2] : memref<4x128xbf16, #tpu.memory_space<vmem>>, vector<4x128xbf16>
    %cst = arith.constant dense<0.000000e+00> : vector<16x128xf32>
    %3 = tpu.matmul %1, %2, %cst {dimension_numbers = #tpu.dot_dimension_numbers<[1], [0], [0], [1], [0, 0, 1, 1], [], []>} : vector<16x4xbf16>, vector<4x128xbf16>, vector<16x128xf32> -> vector<16x128xf32>
    %c0_3 = arith.constant 0 : index
    %c0_4 = arith.constant 0 : index
    %4 = vector.load %arg3[%c0_3, %c0_4] : memref<1x128xf32, #tpu.memory_space<vmem>>, vector<1x128xf32>
    %5 = vector.broadcast %4 : vector<1x128xf32> to vector<16x128xf32>
    %6 = arith.addf %3, %5 : vector<16x128xf32>
    %cst_5 = arith.constant 0.000000e+00 : f32
    %7 = vector.broadcast %cst_5 : f32 to vector<16x128xf32>
    %8 = arith.maximumf %6, %7 : vector<16x128xf32>
    %9 = arith.truncf %8 : vector<16x128xf32> to vector<16x128xbf16>
    %c0_6 = arith.constant 0 : index
    %c0_7 = arith.constant 0 : index
    %10 = vector.load %arg4[%c0_6, %c0_7] : memref<128x128xbf16, #tpu.memory_space<vmem>>, vector<128x128xbf16>
    %cst_8 = arith.constant dense<0.000000e+00> : vector<16x128xf32>
    %11 = tpu.matmul %9, %10, %cst_8 {dimension_numbers = #tpu.dot_dimension_numbers<[1], [0], [0], [1], [0, 0, 1, 1], [], []>} : vector<16x128xbf16>, vector<128x128xbf16>, vector<16x128xf32> -> vector<16x128xf32>
    %c0_9 = arith.constant 0 : index
    %c0_10 = arith.constant 0 : index
    %12 = vector.load %arg5[%c0_9, %c0_10] : memref<1x128xf32, #tpu.memory_space<vmem>>, vector<1x128xf32>
    %13 = vector.broadcast %12 : vector<1x128xf32> to vector<16x128xf32>
    %14 = arith.addf %11, %13 : vector<16x128xf32>
    %cst_11 = arith.constant 0.000000e+00 : f32
    %15 = vector.broadcast %cst_11 : f32 to vector<16x128xf32>
    %16 = arith.maximumf %14, %15 : vector<16x128xf32>
    %17 = arith.truncf %16 : vector<16x128xf32> to vector<16x128xbf16>
    %c0_12 = arith.constant 0 : index
    %c0_13 = arith.constant 0 : index
    %18 = vector.load %arg6[%c0_12, %c0_13] : memref<128x128xbf16, #tpu.memory_space<vmem>>, vector<128x128xbf16>
    %cst_14 = arith.constant dense<0.000000e+00> : vector<16x128xf32>
    %19 = tpu.matmul %17, %18, %cst_14 {dimension_numbers = #tpu.dot_dimension_numbers<[1], [0], [0], [1], [0, 0, 1, 1], [], []>} : vector<16x128xbf16>, vector<128x128xbf16>, vector<16x128xf32> -> vector<16x128xf32>
    %c0_15 = arith.constant 0 : index
    %c0_16 = arith.constant 0 : index
    %20 = vector.load %arg7[%c0_15, %c0_16] : memref<1x128xf32, #tpu.memory_space<vmem>>, vector<1x128xf32>
    %21 = vector.broadcast %20 : vector<1x128xf32> to vector<16x128xf32>
    %22 = arith.addf %19, %21 : vector<16x128xf32>
    %23 = arith.truncf %22 : vector<16x128xf32> to vector<16x128xbf16>
    %c0_17 = arith.constant 0 : index
    %c0_18 = arith.constant 0 : index
    %24 = vector.load %arg8[%c0_17, %c0_18] : memref<16x128xbf16, #tpu.memory_space<vmem>>, vector<16x128xbf16>
    tpu.vector_store %arg8[%c0_17, %c0_18], %23 {strides = array<i32>} : memref<16x128xbf16, #tpu.memory_space<vmem>>, vector<16x128xbf16>,
    return
  }
  func.func @transform_0(%arg0: i32) -> (i32, i32) {
    %c0_i32 = arith.constant 0 : i32
    %c0_i32_0 = arith.constant 0 : i32
    return %arg0, %c0_i32 : i32, i32
  }
  func.func @transform_1(%arg0: i32) -> (i32, i32) {
    %c0_i32 = arith.constant 0 : i32
    %c0_i32_0 = arith.constant 0 : i32
    %c0_i32_1 = arith.constant 0 : i32
    return %c0_i32, %c0_i32_0 : i32, i32
  }
  func.func @transform_2(%arg0: i32) -> (i32, i32) {
    %c0_i32 = arith.constant 0 : i32
    %c0_i32_0 = arith.constant 0 : i32
    %c0_i32_1 = arith.constant 0 : i32
    return %c0_i32, %c0_i32_0 : i32, i32
  }
  func.func @transform_3(%arg0: i32) -> (i32, i32) {
    %c0_i32 = arith.constant 0 : i32
    %c0_i32_0 = arith.constant 0 : i32
    %c0_i32_1 = arith.constant 0 : i32
    return %c0_i32, %c0_i32_0 : i32, i32
  }
  func.func @transform_4(%arg0: i32) -> (i32, i32) {
    %c0_i32 = arith.constant 0 : i32
    %c0_i32_0 = arith.constant 0 : i32
    %c0_i32_1 = arith.constant 0 : i32
    return %c0_i32, %c0_i32_0 : i32, i32
  }
  func.func @transform_5(%arg0: i32) -> (i32, i32) {
    %c0_i32 = arith.constant 0 : i32
    %c0_i32_0 = arith.constant 0 : i32
    %c0_i32_1 = arith.constant 0 : i32
    return %c0_i32, %c0_i32_0 : i32, i32
  }
  func.func @transform_6(%arg0: i32) -> (i32, i32) {
    %c0_i32 = arith.constant 0 : i32
    %c0_i32_0 = arith.constant 0 : i32
    %c0_i32_1 = arith.constant 0 : i32
    return %c0_i32, %c0_i32_0 : i32, i32
  }
  func.func @transform_7(%arg0: i32) -> (i32, i32) {
    %c0_i32 = arith.constant 0 : i32
    %c0_i32_0 = arith.constant 0 : i32
    return %arg0, %c0_i32 : i32, i32
  }
}

</mosaic_0001>

<bundles_post_ra>
// kernel: _qnetwork_forward_impl.1
= control target key start
LH: loop header
LB: loop body
LE: loop exit
PB: predicated region body
PF: predicated region fallthrough
CT: control target
= control target key end

     0   :  { %12 = vsyncpa [#allocation3], 0  ;;  %s485_s0 = inlined_call_operand.vmem [shape: f32[16,4], index: 0, kind: input, shape index: {}]   ;;  %s486_s1 = inlined_call_operand.vmem [shape: bf16[4,128], index: 1, kind: input, shape index: {}]   ;;  %s487_s2 = inlined_call_operand.vmem [shape: f32[1,128], index: 2, kind: input, shape index: {}]   ;;  %s488_s3 = inlined_call_operand.hbm [shape: bf16[128,128], index: 3, kind: input, shape index: {}]   ;;  %s489_s4 = inlined_call_operand.vmem [shape: f32[1,128], index: 4, kind: input, shape index: {}]   ;;  %s490_s5 = inlined_call_operand.hbm [shape: bf16[128,128], index: 5, kind: input, shape index: {}]   ;;  %s491_s6 = inlined_call_operand.vmem [shape: f32[1,128], index: 6, kind: input, shape index: {}]   ;;  %s492_s7 = inlined_call_operand.vmem [shape: bf16[16,128], index: 7, kind: output, shape index: {}]  }
   0x1   :  { %s24_s26 = sshll.u32 %s488_s3, 4  ;;  %s25_s26 = int_to_ptr.hbm [resolvable:$true] %s24_s26 }
   0x2   :  { %13 = vsyncpa [#allocation5], 0  ;;  %s414_s27 = smov [#allocation2]   ;;  %s39_s8 = sshll.u32 %s490_s5, 4  ;;  %s40_s8 = int_to_ptr.hbm [resolvable:$true] %s39_s8 }
   0x3   :  { %s26_s28 = sshll.u32 %s414_s27, 4  ;;  %s415_s9 = smov 64   ;;  %s27_s28 = int_to_ptr.vmem [resolvable:$true] %s26_s28 }
   0x4   :  { %s416_s10 = smov 4   ;;  %s417_s11 = smov [#allocation4]  }
   0x5   :  { %32 = dma.hbm_to_vmem [thread:$0]  %s25_s26, 1024, %s27_s28, [#allocation3], %s415_s9, %s415_s9, %s416_s10  }
   0x6   :  { %s41_s12 = sshll.u32 %s417_s11, 4  ;;  %s42_s12 = int_to_ptr.vmem [resolvable:$true] %s41_s12 }
   0x7   :  { %47 = dma.hbm_to_vmem [thread:$0]  %s40_s8, 1024, %s42_s12, [#allocation5], %s415_s9, %s415_s9, %s416_s10  }
   0x8   :  { %410 = dma.done.wait [#allocation3], 1024  }
   0x9   :  { %411 = vsyncadd [#allocation3], 4294966272 }
   0xa   :  { %412 = dma.done.wait [#allocation5], 1024  }
   0xb   :  { %413 = vsyncadd [#allocation5], 4294966272  ;;  %vm71_vm0 = vcmask 1041408   ;;  %v62_v0 = vld [vmem:[%s486_s1] sm:$0x3]  ;;  %v60_v2 = vld [vmem:[%s485_s0 + $0x8] sm:$0xff] }
   0xc   :  { %v59_v1 = vld [vmem:[%s485_s0] sm:$0xff]  ;;  %v73_v3 = vsel %vm71_vm0, %v62_v0, 0  ;;  %v341_v5 = vld [vmem:[#allocation2 + $0x38] sm:$0xff]  ;;  %vm67_vm1 = vcmask 31744   ;;  %v340_v6 = vld [vmem:[#allocation2 + $0x30] sm:$0xff] }
   0xd   :  { %v61_v4 = vpack.c.bf16 %v60_v2, %v59_v1  ;;  %82 = vmatpush.bf16.msra.mxu0 %v73_v3  ;;  %160 = vmatpush.bf16.msra.mxu1 %v341_v5  ;;  %v339_v7 = vld [vmem:[#allocation2 + $0x28] sm:$0xff]  ;;  %v338_v8 = vld [vmem:[#allocation2 + $0x20] sm:$0xff]  ;;  %v337_v9 = vld [vmem:[#allocation2 + $0x18] sm:$0xff] }
   0xe   :  { %v336_v10 = vld [vmem:[#allocation2 + $0x10] sm:$0xff]  ;;  %v335_v11 = vld [vmem:[#allocation2 + $0x8] sm:$0xff]  ;;  %v334_v12 = vld [vmem:[#allocation2] sm:$0xff] }
   0xf   :  { %v349_v13 = vld [vmem:[#allocation4 + $0x38] sm:$0xff]  ;;  %v348_v14 = vld [vmem:[#allocation4 + $0x30] sm:$0xff]  ;;  %v347_v15 = vld [vmem:[#allocation4 + $0x28] sm:$0xff] }
  0x10   :  { %269 = vmatmul.msk.bf16.vlgmr.msra.gmra.mxu0 %vm67_vm1, %v61_v4  ;;  %245 = vmatpush.bf16.msra.mxu2 %v349_v13  ;;  %v346_v16 = vld [vmem:[#allocation4 + $0x20] sm:$0xff]  ;;  %v345_v25 = vld [vmem:[#allocation4 + $0x18] sm:$0xff]  ;;  %v344_v26 = vld [vmem:[#allocation4 + $0x10] sm:$0xff] }
  0x11   :  { %161 = vmatpush.bf16.msra.mxu1 %v340_v6  ;;  %v359_v18 = vld [vmem:[%s487_s2] ss:$0 sm:$0xff]  ;;  %v343_v27 = vld [vmem:[#allocation4 + $0x8] sm:$0xff] }
  0x12   :  { %v342_v28 = vld [vmem:[#allocation4] sm:$0xff] }
  0x13   :  { %v360_v30 = vld [vmem:[%s489_s4] ss:$0 sm:$0xff] }
  0x14   :  { %246 = vmatpush.bf16.msra.mxu2 %v348_v14  ;;  %v361_v38 = vld [vmem:[%s491_s6] ss:$0 sm:$0xff] }
  0x15   :  { %162 = vmatpush.bf16.msra.mxu1 %v339_v7 }
  0x18   :  { %247 = vmatpush.bf16.msra.mxu2 %v347_v15 }
  0x19   :  { %163 = vmatpush.bf16.msra.mxu1 %v338_v8 }
  0x1c   :  { %248 = vmatpush.bf16.msra.mxu2 %v346_v16 }
  0x1d   :  { %164 = vmatpush.bf16.msra.mxu1 %v337_v9 }
  0x20   :  { %249 = vmatpush.bf16.msra.mxu2 %v345_v25 }
  0x21   :  { %165 = vmatpush.bf16.msra.mxu1 %v336_v10 }
  0x24   :  { %250 = vmatpush.bf16.msra.mxu2 %v344_v26 }
  0x25   :  { %166 = vmatpush.bf16.msra.mxu1 %v335_v11 }
  0x28   :  { %251 = vmatpush.bf16.msra.mxu2 %v343_v27 }
  0x29   :  { %167 = vmatpush.bf16.msra.mxu1 %v334_v12 }
  0x2c   :  { %252 = vmatpush.bf16.msra.mxu2 %v342_v28 }
  0x8d   :  { %v84_v17 = vpop.f32.mrf.mxu0 }
  0x8e   :  { %v85_v19 = vadd.f32 %v359_v18, %v84_v17 }
  0x90   :  { %v89_v22 = vmax.f32 %v85_v19, 0.0 }
  0x95   :  { %v86_v20 = vpop.f32.mrf.mxu0 }
  0x96   :  { %v87_v21 = vadd.f32 %v359_v18, %v86_v20 }
  0x98   :  { %v90_v23 = vmax.f32 %v87_v21, 0.0 }
  0x9a   :  { %v91_v24 = vpack.c.bf16 %v90_v23, %v89_v22 }
  0x9c   :  { %168 = vmatmul.bf16.vlgmr.msra.gmra.mxu1 %v91_v24 }
 0x119   :  { %v169_v29 = vpop.f32.mrf.mxu1 }
 0x11a   :  { %v170_v31 = vadd.f32 %v360_v30, %v169_v29 }
 0x11c   :  { %v174_v34 = vmax.f32 %v170_v31, 0.0 }
 0x121   :  { %v171_v32 = vpop.f32.mrf.mxu1 }
 0x122   :  { %v172_v33 = vadd.f32 %v360_v30, %v171_v32 }
 0x124   :  { %v175_v35 = vmax.f32 %v172_v33, 0.0 }
 0x126   :  { %v176_v36 = vpack.c.bf16 %v175_v35, %v174_v34 }
 0x128   :  { %253 = vmatmul.bf16.vlgmr.msra.gmra.mxu2 %v176_v36 }
 0x1ab   :  { %v254_v37 = vpop.f32.mrf.mxu2 }
 0x1ac   :  { %v255_v40 = vadd.f32 %v361_v38, %v254_v37 }
 0x1b3   :  { %v256_v39 = vpop.f32.mrf.mxu2 }
 0x1b4   :  { %v257_v41 = vadd.f32 %v361_v38, %v256_v39 }
 0x1b6   :  { %v353_v42 = vpack.c.bf16 %v257_v41, %v255_v40 }
 0x1b8   :  { %354 = vst [vmem:[%s492_s7] sm:$0xff] %v353_v42  }
 0x1b9   :  { %267 = vsyncpa [#allocation3], 1 }
 0x1ba   :  { %268 = vsyncpa [#allocation5], 1 }

</bundles_post_ra>
